<compile_context>
chip_gen: v5e
topology: v5e:2x2
jax: 0.10.0
libtpu: 0.0.40
codegen_flags: <defaults>
</compile_context>

<pallas_src>
import functools

import jax
import jax.numpy as jnp
from jax.experimental import pallas as pl
from jax.experimental.pallas import tpu as pltpu


def _round_up(x, m):
    return ((x + m - 1) // m) * m


def _vmem_limit_bytes(per_operand_bytes):
    """Scoped-VMEM request: sum of (double-buffer-counted) operand bytes plus
    headroom for compiler temporaries, clamped to v7x's 64 MiB physical VMEM
    so the request is valid on every TPU generation."""
    return int(min(64 << 20, sum(per_operand_bytes) + (16 << 20)))


# ---------------------------------------------------------------------------
# Kernels
# ---------------------------------------------------------------------------
def _eval_kernel(has_bias, *refs):
    """logits = linear2(linear1(emb)); bf16 MXU matmuls, f32 accumulation."""
    if has_bias:
        emb_ref, w1t_ref, w2t_ref, b2_ref, out_ref = refs
    else:
        emb_ref, w1t_ref, w2t_ref, out_ref = refs
        b2_ref = None

    emb = emb_ref[...].astype(jnp.bfloat16)                  # VPU cast, hidden
    h = jnp.dot(emb, w1t_ref[...],
                preferred_element_type=jnp.float32)          # (TB, nfeat) f32
    logits = jnp.dot(h.astype(jnp.bfloat16), w2t_ref[...],
                     preferred_element_type=jnp.float32)     # (TB, Cp)   f32
    if b2_ref is not None:
        logits = logits + b2_ref[...]
    out_ref[...] = logits


def _train_pass1_kernel(has_bias, *refs):
    """Train-split pass 1 (fully tiled / 'parallel'):
         logits = linear2(linear1(emb))              (bf16 MXU, f32 acc)
         mask   = |linear2(emb) - sum(emb^2)| < 1e-5 (f32 MXU path)
       Streams  where(mask, +inf, logits)  plus the per-tile min of the
       PRE-fill logits; global min + masked_fill happen in pass 2."""
    if has_bias:
        (emb_ref, w1t_ref, w2tb_ref, w2tf_ref, b2_ref,
         out_ref, min_ref) = refs
    else:
        (emb_ref, w1t_ref, w2tb_ref, w2tf_ref,
         out_ref, min_ref) = refs
        b2_ref = None

    emb = emb_ref[...]                                       # (TB, nfeat) f32

    # logits path: two bf16 MXU passes, f32 accumulation.
    h = jnp.dot(emb.astype(jnp.bfloat16), w1t_ref[...],
                preferred_element_type=jnp.float32)          # (TB, nfeat) f32
    logits = jnp.dot(h.astype(jnp.bfloat16), w2tb_ref[...],
                     preferred_element_type=jnp.float32)     # (TB, Cp)   f32

    # mask path: the |.| < 1e-5 comparison must stay f32, so only this matmul
    # pays the multi-pass f32 MXU cost.
    # TODO(synk): f32 MXU lowering is a bf16 multi-pass decomposition; for
    # very large nfeat / large-norm embeddings the absolute 1e-5 threshold
    # may need to become a relative/compensated comparison.
    raw = jnp.dot(emb, w2tf_ref[...],
                  preferred_element_type=jnp.float32)        # (TB, Cp) f32

    if b2_ref is not None:
        b2 = b2_ref[...]
        logits = logits + b2
        raw = raw + b2                                       # linear2 incl. bias

    sq = jnp.sum(emb * emb, axis=1, keepdims=True)           # (TB, 1) f32
    mask = jnp.abs(raw - sq) < 1e-5                          # (TB, Cp) bool

    # Per-tile min of the PRE-fill logits.  Padded batch rows and padded W2
    # columns were edge-replicated, so duplicates never change the min and no
    # validity masking is needed.
    m = jnp.min(logits, axis=1, keepdims=True)
    m = jnp.min(m, axis=0, keepdims=True)                    # (1, 1)
    min_ref[...] = jnp.broadcast_to(m, min_ref.shape)

    # Stream logits with a +inf sentinel at masked positions.
    out_ref[...] = jnp.where(mask, jnp.inf, logits)


# ---------------------------------------------------------------------------
# Wrapper
# ---------------------------------------------------------------------------
def prepare_sentbert_params(w1, w2, b2=None):
    """Pre-transpose / pre-cast / pad the (static) weights once at init time."""
    nfeat = w1.shape[0]
    class_num = w2.shape[0]
    cp = _round_up(class_num, 128)                 # lane-dense output columns

    w1t = jnp.asarray(w1, jnp.float32).T           # (nfeat, nfeat)
    w2t = jnp.asarray(w2, jnp.float32).T           # (nfeat, C)
    # Edge-replicate padded class columns: padded logits columns are exact
    # duplicates of a real class, so per-tile mins need no column masking.
    w2t = jnp.pad(w2t, ((0, 0), (0, cp - class_num)), mode="edge")

    if b2 is None:
        b2p = None                                 # linear_bias=False: no add
    else:
        b2p = jnp.pad(jnp.asarray(b2, jnp.float32).reshape(1, class_num),
                      ((0, 0), (0, cp - class_num)), mode="edge")

    return {
        "nfeat": nfeat,
        "class_num": class_num,
        "padded_class_num": cp,
        "w1t_bf16": w1t.astype(jnp.bfloat16),
        "w2t_bf16": w2t.astype(jnp.bfloat16),
        "w2t_f32": w2t,            # the train mask comparison must stay f32
        "b2": b2p,
    }


def sent_bert_logits(embeddings, params, split=None):
    """embeddings: (B, nfeat).  Returns (B, class_num) f32 logits."""
    batch, nfeat = embeddings.shape
    assert nfeat == params["nfeat"]
    class_num = params["class_num"]
    cp = params["padded_class_num"]
    has_bias = params["b2"] is not None
    train = (split == "train")       # static Python flag -> two kernel variants

    # Batch tiling: 256-row tiles feed the 2x256 MXU on v6e/v7x and amortize
    # the ~0.35us per-grid-step overhead; 128 / 8-aligned fallback for small
    # batches.
    if batch >= 256:
        tile_b = 256
    elif batch >= 128:
        tile_b = 128
    else:
        tile_b = _round_up(max(batch, 1), 8)
    bp = _round_up(batch, tile_b)
    grid = (bp // tile_b,)
    num_tiles = grid[0]

    emb = jnp.asarray(embeddings, jnp.float32)
    if bp != batch:
        # Edge-replicate padded rows: duplicate logits never change the min.
        emb = jnp.pad(emb, ((0, bp - batch), (0, 0)), mode="edge")

    bias_specs = [pl.BlockSpec((1, cp), lambda i: (0, 0))] if has_bias else []
    bias_args = [params["b2"]] if has_bias else []

    emb_spec = pl.BlockSpec((tile_b, nfeat), lambda i: (i, 0))   # tiled
    w1_spec = pl.BlockSpec((nfeat, nfeat), lambda i: (0, 0))     # resident
    w2_spec = pl.BlockSpec((nfeat, cp), lambda i: (0, 0))        # resident
    out_spec = pl.BlockSpec((tile_b, cp), lambda i: (i, 0))      # streamed
    # TODO(synk): for very large class_num, add a class-dim grid axis so W2^T
    # need not be fully VMEM-resident (out/W2/bias tiled along the lane axis).

    f32b, bf16b = 4, 2
    if not train:
        vmem = _vmem_limit_bytes([
            2 * tile_b * nfeat * f32b,        # emb tile (double-buffered)
            2 * nfeat * nfeat * bf16b,        # W1^T
            2 * nfeat * cp * bf16b,           # W2^T (bf16)
            2 * tile_b * cp * f32b,           # out tile
        ] + ([2 * cp * f32b] if has_bias else []))
        out = pl.pallas_call(
            functools.partial(_eval_kernel, has_bias),
            grid=grid,
            in_specs=[emb_spec, w1_spec, w2_spec] + bias_specs,
            out_specs=out_spec,
            out_shape=jax.ShapeDtypeStruct((bp, cp), jnp.float32),
            compiler_params=pltpu.CompilerParams(
                dimension_semantics=("parallel",),
                vmem_limit_bytes=vmem),
        )(emb, params["w1t_bf16"], params["w2t_bf16"], *bias_args)
        return out[:batch, :class_num]

    # ---- train: pass 1 (tiled, parallel, streamed) ----
    vmem = _vmem_limit_bytes([
        2 * tile_b * nfeat * f32b,            # emb tile
        2 * nfeat * nfeat * bf16b,            # W1^T
        2 * nfeat * cp * bf16b,               # W2^T bf16 (logits)
        2 * nfeat * cp * f32b,                # W2^T f32  (mask path)
        2 * tile_b * cp * f32b,               # out tile
        2 * 8 * 128 * f32b,                   # per-tile min block
    ] + ([2 * cp * f32b] if has_bias else []))

    logits_s, mins = pl.pallas_call(
        functools.partial(_train_pass1_kernel, has_bias),
        grid=grid,
        in_specs=[emb_spec, w1_spec, w2_spec,
                  pl.BlockSpec((nfeat, cp), lambda i: (0, 0))] + bias_specs,
        out_specs=(out_spec, pl.BlockSpec((8, 128), lambda i: (i, 0))),
        out_shape=(jax.ShapeDtypeStruct((bp, cp), jnp.float32),
                   jax.ShapeDtypeStruct((8 * num_tiles, 128), jnp.float32)),
        compiler_params=pltpu.CompilerParams(
            dimension_semantics=("parallel",),
            vmem_limit_bytes=vmem),
    )(emb, params["w1t_bf16"], params["w2t_bf16"], params["w2t_f32"],
      *bias_args)

    # ---- train: pass 2 (trivial streaming masked_fill with the global min) ----
    gmin = jnp.min(mins)
    logits = logits_s[:batch, :class_num]
    return jnp.where(jnp.isposinf(logits), gmin, logits)


def encoder_stub(src_tokens, emb_table, pad_idx):
    # TODO(synk): real SentenceTransformer('bert-base-nli-mean-tokens').encode
    # (string detok + pretrained BERT) has no Pallas equivalent; deterministic
    # mean-pooled token embeddings stand in for it.
    valid = (src_tokens != pad_idx).astype(jnp.float32)[..., None]   # (B, T, 1)
    tok = emb_table[src_tokens]                                      # (B, T, nfeat)
    summed = (tok * valid).sum(axis=1)
    count = jnp.maximum(valid.sum(axis=1), 1.0)
    return summed / count                                            # (B, nfeat)


if __name__ == "__main__":
    key = jax.random.PRNGKey(0)
    k_vocab, k_tok, k_sent = jax.random.split(key, 3)

    # small shapes: batch=2, seq=8, nfeat(hidden)=32, class_num=8, vocab=50
    B, T, nfeat, class_num, vocab, pad_idx = 2, 8, 32, 8, 50, 0

    # synthetic "encoder" parameters + inputs
    emb_table = jax.random.normal(k_vocab, (vocab, nfeat), dtype=jnp.float32) * 0.1
    src_tokens = jax.random.randint(k_tok, (B, T), 1, vocab)
    src_tokens = src_tokens.at[1, 5:].set(pad_idx)   # some padding in row 1

    embeddings = encoder_stub(src_tokens, emb_table, pad_idx)

    # __init__ semantics: linear1.weight = I (eye_ init), linear2.weight =
    # sent_embed, linear_bias=False -> no bias add.  Make class 3 a "self"
    # embedding of sample 0 so the train-split masked_fill path is exercised.
    sent_embed = jax.random.normal(k_sent, (class_num, nfeat), dtype=jnp.float32)
    sent_embed = sent_embed.at[3].set(embeddings[0])
    w1 = jnp.eye(nfeat, dtype=jnp.float32)
    w2 = sent_embed

    params = prepare_sentbert_params(w1, w2, b2=None)

    logits_eval = jax.block_until_ready(
        sent_bert_logits(embeddings, params, split=None))
    logits_train = jax.block_until_ready(
        sent_bert_logits(embeddings, params, split="train"))

    # pure-JAX f32 reference
    ref = (embeddings @ w1.T) @ w2.T
    raw = embeddings @ w2.T
    sq = jnp.sum(embeddings * embeddings, axis=1, keepdims=True)
    mask = jnp.abs(raw - sq) < 1e-5
    ref_train = jnp.where(mask, jnp.min(ref), ref)

    assert logits_eval.shape == (B, class_num)
    assert logits_train.shape == (B, class_num)
    assert bool(mask[0, 3])   # the masked_fill path is actually exercised
    assert jnp.allclose(logits_eval, ref, atol=5e-2, rtol=5e-2)
    assert jnp.allclose(logits_train, ref_train, atol=5e-2, rtol=5e-2)

    print("KERNEL_OK")
</pallas_src>

<mosaic_0001>
module attributes {stable_mosaic.version = 11 : i64} {
  func.func @_eval_kernel(%arg0: i32, %arg1: memref<8x32xf32, #tpu.memory_space<vmem>>, %arg2: memref<32x32xbf16, #tpu.memory_space<vmem>>, %arg3: memref<32x128xbf16, #tpu.memory_space<vmem>>, %arg4: memref<8x128xf32, #tpu.memory_space<vmem>>) attributes {dimension_semantics = [#tpu.dimension_semantics<parallel>], iteration_bounds = array<i64: 1>, scalar_prefetch = 0 : i64, scratch_operands = 0 : i64, tpu.core_type = #tpu.core_type<tc>, window_params = [{transform_indices = @transform_0, window_bounds = array<i64: 8, 32>}, {pipeline_mode = #tpu.pipeline_mode<synchronous>, transform_indices = @transform_1, window_bounds = array<i64: 32, 32>}, {pipeline_mode = #tpu.pipeline_mode<synchronous>, transform_indices = @transform_2, window_bounds = array<i64: 32, 128>}, {transform_indices = @transform_3, window_bounds = array<i64: 8, 128>}]} {
    %c0 = arith.constant 0 : index
    %c0_0 = arith.constant 0 : index
    %0 = vector.load %arg1[%c0, %c0_0] : memref<8x32xf32, #tpu.memory_space<vmem>>, vector<8x32xf32>
    %1 = arith.truncf %0 : vector<8x32xf32> to vector<8x32xbf16>
    %c0_1 = arith.constant 0 : index
    %c0_2 = arith.constant 0 : index
    %2 = vector.load %arg2[%c0_1, %c0_2] : memref<32x32xbf16, #tpu.memory_space<vmem>>, vector<32x32xbf16>
    %cst = arith.constant dense<0.000000e+00> : vector<8x32xf32>
    %3 = tpu.matmul %1, %2, %cst {dimension_numbers = #tpu.dot_dimension_numbers<[1], [0], [0], [1], [0, 0, 1, 1], [], []>} : vector<8x32xbf16>, vector<32x32xbf16>, vector<8x32xf32> -> vector<8x32xf32>
    %4 = arith.truncf %3 : vector<8x32xf32> to vector<8x32xbf16>
    %c0_3 = arith.constant 0 : index
    %c0_4 = arith.constant 0 : index
    %5 = vector.load %arg3[%c0_3, %c0_4] : memref<32x128xbf16, #tpu.memory_space<vmem>>, vector<32x128xbf16>
    %cst_5 = arith.constant dense<0.000000e+00> : vector<8x128xf32>
    %6 = tpu.matmul %4, %5, %cst_5 {dimension_numbers = #tpu.dot_dimension_numbers<[1], [0], [0], [1], [0, 0, 1, 1], [], []>} : vector<8x32xbf16>, vector<32x128xbf16>, vector<8x128xf32> -> vector<8x128xf32>
    %c0_6 = arith.constant 0 : index
    %c0_7 = arith.constant 0 : index
    %7 = vector.load %arg4[%c0_6, %c0_7] : memref<8x128xf32, #tpu.memory_space<vmem>>, vector<8x128xf32>
    tpu.vector_store %arg4[%c0_6, %c0_7], %6 {strides = array<i32>} : memref<8x128xf32, #tpu.memory_space<vmem>>, vector<8x128xf32>,
    return
  }
  func.func @transform_0(%arg0: i32) -> (i32, i32) {
    %c0_i32 = arith.constant 0 : i32
    %c0_i32_0 = arith.constant 0 : i32
    return %arg0, %c0_i32 : i32, i32
  }
  func.func @transform_1(%arg0: i32) -> (i32, i32) {
    %c0_i32 = arith.constant 0 : i32
    %c0_i32_0 = arith.constant 0 : i32
    %c0_i32_1 = arith.constant 0 : i32
    return %c0_i32, %c0_i32_0 : i32, i32
  }
  func.func @transform_2(%arg0: i32) -> (i32, i32) {
    %c0_i32 = arith.constant 0 : i32
    %c0_i32_0 = arith.constant 0 : i32
    %c0_i32_1 = arith.constant 0 : i32
    return %c0_i32, %c0_i32_0 : i32, i32
  }
  func.func @transform_3(%arg0: i32) -> (i32, i32) {
    %c0_i32 = arith.constant 0 : i32
    %c0_i32_0 = arith.constant 0 : i32
    return %arg0, %c0_i32 : i32, i32
  }
}

</mosaic_0001>

<bundles_post_ra>
// kernel: tpu_custom_call.1
= control target key start
LH: loop header
LB: loop body
LE: loop exit
PB: predicated region body
PF: predicated region fallthrough
CT: control target
= control target key end

     0   :  { %8 = vsyncpa [#allocation3], 0  ;;  %s316_s0 = inlined_call_operand.hbm [shape: f32[8,32], index: 0, kind: input, shape index: {}]   ;;  %s317_s1 = inlined_call_operand.hbm [shape: bf16[32,32], index: 1, kind: input, shape index: {}]   ;;  %s318_s2 = inlined_call_operand.hbm [shape: bf16[32,128], index: 2, kind: input, shape index: {}]   ;;  %s319_s3 = inlined_call_operand.hbm [shape: f32[8,128], index: 3, kind: output, shape index: {}]  }
   0x1   :  { %9 = vsyncpa [#allocation6], 0  ;;  %s26_s14 = sshll.u32 %s317_s1, 4  ;;  %s27_s14 = int_to_ptr.hbm [resolvable:$true] %s26_s14 }
   0x2   :  { %10 = vsyncpa [#allocation4], 0  ;;  %s278_s15 = smov [#allocation5]   ;;  %s16_s19 = sshll.u32 %s316_s0, 4  ;;  %s17_s19 = int_to_ptr.hbm [resolvable:$true] %s16_s19 }
   0x3   :  { %s28_s16 = sshll.u32 %s278_s15, 4  ;;  %s279_s20 = smov 64   ;;  %s29_s16 = int_to_ptr.vmem [resolvable:$true] %s28_s16 }
   0x4   :  { %s280_s21 = smov 4   ;;  %s281_s22 = smov [#allocation2]  }
   0x5   :  { %34 = dma.hbm_to_vmem [thread:$0]  %s27_s14, 256, %s29_s16, [#allocation6], %s279_s20, %s279_s20, %s280_s21  }
   0x6   :  { %s18_s23 = sshll.u32 %s281_s22, 4  ;;  %s39_s26 = sshll.u32 %s318_s2, 4  ;;  %s19_s23 = int_to_ptr.vmem [resolvable:$true] %s18_s23  ;;  %s40_s26 = int_to_ptr.hbm [resolvable:$true] %s39_s26 }
   0x7   :  { %21 = dma.hbm_to_vmem [thread:$0]  %s17_s19, 128, %s19_s23, [#allocation3]  }
   0x8   :  { %s282_s1 = smov [#allocation7]  }
   0x9   :  { %s41_s27 = sshll.u32 %s282_s1, 4  ;;  %s42_s27 = int_to_ptr.vmem [resolvable:$true] %s41_s27 }
   0xa   :  { %47 = dma.hbm_to_vmem [thread:$0]  %s40_s26, 256, %s42_s27, [#allocation6], %s279_s20, %s279_s20, %s280_s21  }
   0xb   :  { %272 = dma.done.wait [#allocation3], 128  }
   0xc   :  { %273 = vsyncadd [#allocation3], 4294967168 }
   0xd   :  { %274 = dma.done.wait [#allocation6], 512  }
   0xe   :  { %275 = vsyncadd [#allocation6], 4294966784  ;;  %v167_v0 = vld [vmem:[#allocation5 + $0x8] sm:$0xff]  ;;  %v169_v1 = vld [vmem:[#allocation7 + $0x8] sm:$0xff]  ;;  %vm79_vm0 = vcmask 261120   ;;  %s283_s0 = smov [#allocation8]  }
   0xf   :  { %89 = vmatpush.bf16.msra.mxu0 %v167_v0  ;;  %v166_v2 = vld [vmem:[#allocation5] sm:$0xff]  ;;  %v61_v3 = vld [vmem:[#allocation2] sm:$0xff]  ;;  %122 = vmatpush.bf16.msra.mxu1 %v169_v1  ;;  %v168_v5 = vld [vmem:[#allocation7] sm:$0xff]  ;;  %s135_s2 = sshll.u32 %s283_s0, 4  ;;  %s137_s30 = sshll.u32 %s319_s3, 4  ;;  %s136_s2 = int_to_ptr.vmem [resolvable:$true] %s135_s2  ;;  %s138_s30 = int_to_ptr.hbm [resolvable:$true] %s137_s30 }
  0x10   :  { %v62_v4 = vpack.c.bf16 %v61_v3, %v61_v3 }
  0x13   :  { %90 = vmatpush.bf16.msra.mxu0 %v166_v2  ;;  %123 = vmatpush.bf16.msra.mxu1 %v168_v5 }
  0x16   :  { %156 = vmatmul.msk.bf16.vlgmr.msra.gmra.mxu0 %vm79_vm0, %v62_v4 }
  0x93   :  { %v92_v6 = vpop.f32.mrf.mxu0 }
  0x94   :  { %v96_v7 = vpack.c.bf16 %v92_v6, %v92_v6 }
  0x96   :  { %165 = vmatmul.msk.bf16.vlgmr.msra.gmra.mxu1 %vm79_vm0, %v96_v7 }
  0x9b   :  { %v94_v8 = vpop.f32.mrf.mxu0 }
 0x113   :  { %v125_v9 = vpop.f32.mrf.mxu1 }
 0x114   :  { %129 = vst [vmem:[#allocation8] sm:$0xff] %v125_v9 }
 0x115   :  { %140 = dma.vmem_to_hbm [thread:$0]  %s136_s2, 128, %s138_s30, [#allocation4]  }
 0x11b   :  { %v127_v10 = vpop.f32.mrf.mxu1 }
 0x11c   :  { %276 = dma.done.wait [#allocation4], 128  }
 0x11d   :  { %277 = vsyncadd [#allocation4], 4294967168 }
 0x11e   :  { %145 = vsyncpa [#allocation3], 1 }
 0x11f   :  { %146 = vsyncpa [#allocation6], 1 }
 0x120   :  { %147 = vsyncpa [#allocation4], 1 }

</bundles_post_ra>
